<compile_context>
chip_gen: v5e
topology: v5e:2x2
jax: 0.10.0
libtpu: 0.0.40
codegen_flags: <defaults>
</compile_context>

<pallas_src>
import functools
import math

import jax
import jax.numpy as jnp
from jax.experimental import pallas as pl
from jax.experimental.pallas import tpu as pltpu

_PRED_LANES = 128        # lane-dense int32 slab width for the argmax predictions
_MIB = 1024 * 1024


def _decoder_kernel(x_ref, w_ref, b_ref, logits_ref, preds_ref, rmax_ref, ridx_ref):
    """Grid = (m_tiles, v_tiles, k_tiles); k varies fastest, then v, then m."""
    j = pl.program_id(1)           # vocab tile index
    k = pl.program_id(2)           # hidden (contraction) tile index
    nv = pl.num_programs(1)
    nk = pl.num_programs(2)
    tv = logits_ref.shape[-1]      # static vocab tile width

    # Accumulate directly into the f32 logits output block: its block index (i, j)
    # does not change across the k axis, so it stays resident in VMEM.
    partial = jnp.dot(x_ref[...], w_ref[...], preferred_element_type=jnp.float32)

    @pl.when(k == 0)
    def _():
        logits_ref[...] = partial

    @pl.when(k > 0)
    def _():
        logits_ref[...] += partial

    @pl.when(k == nk - 1)
    def _():
        logits = logits_ref[...] + b_ref[...]                # f32 (tm, tv)
        logits_ref[...] = logits

        # In-tile argmax (first occurrence) in f32, carried lane-dense across tiles.
        tile_max = jnp.max(logits, axis=-1, keepdims=True)                        # (tm, 1)
        tile_idx = (jnp.argmax(logits, axis=-1, keepdims=True).astype(jnp.int32)
                    + j * tv)                                                     # (tm, 1)
        tile_max = jnp.broadcast_to(tile_max, rmax_ref.shape)                     # (tm, 128)
        tile_idx = jnp.broadcast_to(tile_idx, ridx_ref.shape)                     # (tm, 128)

        @pl.when(j == 0)
        def _():
            rmax_ref[...] = tile_max
            ridx_ref[...] = tile_idx

        @pl.when(j > 0)
        def _():
            # Strict '>' keeps the earliest maximal index across vocab tiles
            # (matches torch.argmax first-occurrence tie-break).
            better = tile_max > rmax_ref[...]
            rmax_ref[...] = jnp.where(better, tile_max, rmax_ref[...])
            ridx_ref[...] = jnp.where(better, tile_idx, ridx_ref[...])

        @pl.when(j == nv - 1)
        def _():
            preds_ref[...] = ridx_ref[...]   # plain lane-dense copy, no masked store


def _round_up(x, m):
    return (x + m - 1) // m * m


def _vmem_capacity_bytes():
    try:
        info = pltpu.get_tpu_info()
        cap = getattr(info, "vmem_capacity_bytes", None)
        if cap:
            return int(cap)
    except Exception:
        pass
    return 64 * _MIB   # conservative fallback (v7x per-TensorCore VMEM)


def alphabet_decoder(hidden, weight, bias, *, compute_dtype=jnp.bfloat16,
                     tm=None, tv=None, tk=None, w_buffer_count=2):
    """hidden: (..., H); weight: (H, V); bias: (V,).

    Returns (logits: (..., V) float32, preds: (...,) int32).

    compute_dtype: operand dtype for x/W fed to the MXU (bf16 by default to halve
    weight DMA; pass jnp.float32 for the exact-precision path). Accumulation,
    bias-add and argmax are always float32.
    """
    if compute_dtype is None:
        compute_dtype = jnp.float32
    *lead, H = hidden.shape
    V = weight.shape[1]
    M = math.prod(lead) if lead else 1
    itemsize = jnp.dtype(compute_dtype).itemsize

    M8 = _round_up(max(M, 1), 8)
    V128 = _round_up(V, 128)
    H128 = _round_up(H, 128)

    # ---- tile selection (sized against the actual VMEM of this generation) ----
    vmem_cap = _vmem_capacity_bytes()
    budget = max(16 * _MIB, min(int(vmem_cap * 0.75), vmem_cap - 8 * _MIB))

    if tm is None:
        # Cover every (padded) row in one tile for modest decode-style batches so W
        # is streamed from HBM exactly once; otherwise 256 rows (v6e/v7x 256x256 MXU).
        tm = M8 if M8 <= 1024 else 256
    tm = min(_round_up(tm, 8), M8)
    if tv is None:
        tv = 1024
    tv = min(_round_up(tv, 128), V128)
    if tk is None:
        tk = 2048
    tk = min(_round_up(tk, 128), H128)

    n_w_buf = max(2, int(w_buffer_count))

    def _vmem_bytes(tm_, tv_, tk_):
        return (2 * tm_ * tk_ * itemsize            # x tiles (double-buffered)
                + n_w_buf * tk_ * tv_ * itemsize    # W stream
                + 2 * tv_ * 4                       # bias
                + 2 * tm_ * tv_ * 4                 # f32 logits output block
                + 2 * tm_ * _PRED_LANES * 4         # preds output slab
                + 2 * tm_ * _PRED_LANES * 4)        # rmax/ridx scratch

    # Shrink tk, then tv, then tm until the working set fits (tk/tv shrinkage only
    # adds grid steps; shrinking tm would re-stream W, so it goes last).
    while _vmem_bytes(tm, tv, tk) > budget:
        if tk > 128:
            tk = max(128, _round_up(tk // 2, 128))
        elif tv > 128:
            tv = max(128, _round_up(tv // 2, 128))
        elif tm > 8:
            tm = max(8, _round_up(tm // 2, 8))
        else:
            break

    M_pad = _round_up(M, tm)
    V_pad = _round_up(V, tv)
    H_pad = _round_up(H, tk)
    nm, nv, nk = M_pad // tm, V_pad // tv, H_pad // tk

    # ---- operand prep: single cast to the compute dtype, pad only if needed ----
    x2d = hidden.reshape(M, H)
    if x2d.dtype != compute_dtype:
        x2d = x2d.astype(compute_dtype)
    w = weight if weight.dtype == compute_dtype else weight.astype(compute_dtype)
    b = bias if bias.dtype == jnp.float32 else bias.astype(jnp.float32)

    if (M_pad, H_pad) != (M, H):
        x2d = jnp.pad(x2d, ((0, M_pad - M), (0, H_pad - H)))
    if (H_pad, V_pad) != (H, V):
        w = jnp.pad(w, ((0, H_pad - H), (0, V_pad - V)))
    if V_pad != V:
        # Padded vocab columns get a -huge bias so they can never win the argmax.
        b = jnp.pad(b, (0, V_pad - V), constant_values=jnp.finfo(jnp.float32).min)
    b = b.reshape(1, V_pad)

    cost = pl.CostEstimate(
        flops=2 * M_pad * H_pad * V_pad,
        transcendentals=0,
        bytes_accessed=(nv * M_pad * H_pad * itemsize     # x re-read per vocab tile
                        + nm * H_pad * V_pad * itemsize   # W re-read per row tile
                        + nm * V_pad * 4                  # bias
                        + M_pad * V_pad * 4               # logits writeback
                        + M_pad * _PRED_LANES * 4),       # preds writeback
    )

    est = _vmem_bytes(tm, tv, tk)
    vmem_limit = int(min(vmem_cap - 8 * _MIB, max(32 * _MIB, 2 * est)))

    w_spec_kwargs = {}
    if n_w_buf > 2:
        # Deeper prefetch for the one large streaming input (opt-in when DMA is exposed).
        w_spec_kwargs["pipeline_mode"] = pl.Buffered(n_w_buf)

    grid_spec = pltpu.PrefetchScalarGridSpec(
        num_scalar_prefetch=0,
        grid=(nm, nv, nk),
        in_specs=[
            pl.BlockSpec((tm, tk), lambda i, j, k: (i, k)),                    # x tile
            pl.BlockSpec((tk, tv), lambda i, j, k: (k, j), **w_spec_kwargs),   # W tile
            pl.BlockSpec((1, tv), lambda i, j, k: (0, j)),                     # bias tile
        ],
        out_specs=(
            pl.BlockSpec((tm, tv), lambda i, j, k: (i, j)),                    # logits
            pl.BlockSpec((tm, _PRED_LANES), lambda i, j, k: (i, 0)),           # preds slab
        ),
        scratch_shapes=[
            pltpu.VMEM((tm, _PRED_LANES), jnp.float32),    # running max (lane-dense)
            pltpu.VMEM((tm, _PRED_LANES), jnp.int32),      # running argmax (lane-dense)
        ],
    )

    # TODO(synk): on v7x, shard the vocab axis (not rows) across the 2 TensorCores with
    # a small cross-core argmax combine to halve per-chip weight traffic when nm == 1.
    logits_p, preds_p = pl.pallas_call(
        _decoder_kernel,
        out_shape=(
            jax.ShapeDtypeStruct((M_pad, V_pad), jnp.float32),
            jax.ShapeDtypeStruct((M_pad, _PRED_LANES), jnp.int32),
        ),
        grid_spec=grid_spec,
        compiler_params=pltpu.CompilerParams(
            dimension_semantics=("parallel", "arbitrary", "arbitrary"),
            vmem_limit_bytes=vmem_limit,
        ),
        cost_estimate=cost,
    )(x2d, w, b)

    logits = logits_p[:M, :V].reshape(tuple(lead) + (V,))
    preds = preds_p[:M, 0].reshape(tuple(lead))
    return logits, preds


if __name__ == "__main__":
    # Small shapes consistent with the module: batch=2, seq=8, hidden=32, vocab=16.
    batch, seq, hidden_size, vocab = 2, 8, 32, 16

    key = jax.random.PRNGKey(0)
    k_x, k_w, k_b = jax.random.split(key, 3)

    hidden = jax.random.normal(k_x, (batch, seq, hidden_size), dtype=jnp.float32)
    # Deterministic parameter init (mimics nn.Linear's uniform(-1/sqrt(H), 1/sqrt(H))).
    bound = 1.0 / math.sqrt(hidden_size)
    weight = jax.random.uniform(k_w, (hidden_size, vocab), jnp.float32, -bound, bound)
    bias = jax.random.uniform(k_b, (vocab,), jnp.float32, -bound, bound)

    ref_logits = (jnp.einsum("bsh,hv->bsv", hidden, weight,
                             precision=jax.lax.Precision.HIGHEST) + bias)

    # Exact-semantics path (f32 operands). Tolerance accommodates MXU pass precision;
    # preds are checked as the argmax of the kernel's own logits (first-occurrence
    # tie-break), which is the module's semantics.
    logits_f32, preds_f32 = jax.jit(
        functools.partial(alphabet_decoder, compute_dtype=jnp.float32)
    )(hidden, weight, bias)
    jax.block_until_ready((logits_f32, preds_f32))
    assert logits_f32.shape == (batch, seq, vocab)
    assert preds_f32.shape == (batch, seq)
    assert jnp.allclose(logits_f32, ref_logits, atol=1e-2, rtol=1e-2)
    assert jnp.array_equal(preds_f32,
                           jnp.argmax(logits_f32, axis=-1).astype(jnp.int32))

    # Default fast path: bf16 operands, f32 accumulation (halves W DMA traffic).
    logits_bf, preds_bf = jax.jit(alphabet_decoder)(hidden, weight, bias)
    jax.block_until_ready((logits_bf, preds_bf))
    assert logits_bf.shape == (batch, seq, vocab)
    assert preds_bf.shape == (batch, seq)
    assert jnp.allclose(logits_bf, ref_logits, atol=5e-2, rtol=5e-2)
    assert jnp.array_equal(preds_bf,
                           jnp.argmax(logits_bf, axis=-1).astype(jnp.int32))

    print("KERNEL_OK")
</pallas_src>

<mosaic_0001>
module attributes {stable_mosaic.version = 11 : i64} {
  func.func @_decoder_kernel(%arg0: i32, %arg1: i32, %arg2: i32, %arg3: memref<16x128xf32, #tpu.memory_space<vmem>>, %arg4: memref<128x128xf32, #tpu.memory_space<vmem>>, %arg5: memref<1x128xf32, #tpu.memory_space<vmem>>, %arg6: memref<16x128xf32, #tpu.memory_space<vmem>>, %arg7: memref<16x128xi32, #tpu.memory_space<vmem>>, %arg8: memref<16x128xf32, #tpu.memory_space<vmem>>, %arg9: memref<16x128xi32, #tpu.memory_space<vmem>>) attributes {dimension_semantics = [#tpu.dimension_semantics<parallel>, #tpu.dimension_semantics<arbitrary>, #tpu.dimension_semantics<arbitrary>], iteration_bounds = array<i64: 1, 1, 1>, scalar_prefetch = 0 : i64, scratch_operands = 2 : i64, tpu.core_type = #tpu.core_type<tc>, window_params = [{transform_indices = @transform_0, window_bounds = array<i64: 16, 128>}, {transform_indices = @transform_1, window_bounds = array<i64: 128, 128>}, {transform_indices = @transform_2, window_bounds = array<i64: 1, 128>}, {transform_indices = @transform_3, window_bounds = array<i64: 16, 128>}, {transform_indices = @transform_4, window_bounds = array<i64: 16, 128>}]} {
    %c0 = arith.constant 0 : index
    %c0_0 = arith.constant 0 : index
    %0 = vector.load %arg3[%c0, %c0_0] : memref<16x128xf32, #tpu.memory_space<vmem>>, vector<16x128xf32>
    %c0_1 = arith.constant 0 : index
    %c0_2 = arith.constant 0 : index
    %1 = vector.load %arg4[%c0_1, %c0_2] : memref<128x128xf32, #tpu.memory_space<vmem>>, vector<128x128xf32>
    %cst = arith.constant dense<0.000000e+00> : vector<16x128xf32>
    %2 = tpu.matmul %0, %1, %cst {dimension_numbers = #tpu.dot_dimension_numbers<[1], [0], [0], [1], [0, 0, 1, 1], [], []>} : vector<16x128xf32>, vector<128x128xf32>, vector<16x128xf32> -> vector<16x128xf32>
    %c0_i32 = arith.constant 0 : i32
    %3 = arith.cmpi eq, %arg2, %c0_i32 : i32
    %4 = arith.extui %3 : i1 to i32
    %c0_i32_3 = arith.constant 0 : i32
    %5 = arith.cmpi ne, %4, %c0_i32_3 : i32
    scf.if %5 {
      %c0_8 = arith.constant 0 : index
      %c0_9 = arith.constant 0 : index
      %12 = vector.load %arg6[%c0_8, %c0_9] : memref<16x128xf32, #tpu.memory_space<vmem>>, vector<16x128xf32>
      tpu.vector_store %arg6[%c0_8, %c0_9], %2 {strides = array<i32>} : memref<16x128xf32, #tpu.memory_space<vmem>>, vector<16x128xf32>,
    } else {
    }
    %c0_i32_4 = arith.constant 0 : i32
    %6 = arith.cmpi sgt, %arg2, %c0_i32_4 : i32
    %7 = arith.extui %6 : i1 to i32
    %c0_i32_5 = arith.constant 0 : i32
    %8 = arith.cmpi ne, %7, %c0_i32_5 : i32
    scf.if %8 {
      %c0_8 = arith.constant 0 : index
      %c0_9 = arith.constant 0 : index
      %12 = vector.load %arg6[%c0_8, %c0_9] : memref<16x128xf32, #tpu.memory_space<vmem>>, vector<16x128xf32>
      %13 = arith.addf %12, %2 : vector<16x128xf32>
      %c0_10 = arith.constant 0 : index
      %c0_11 = arith.constant 0 : index
      %14 = vector.load %arg6[%c0_10, %c0_11] : memref<16x128xf32, #tpu.memory_space<vmem>>, vector<16x128xf32>
      tpu.vector_store %arg6[%c0_10, %c0_11], %13 {strides = array<i32>} : memref<16x128xf32, #tpu.memory_space<vmem>>, vector<16x128xf32>,
    } else {
    }
    %c0_i32_6 = arith.constant 0 : i32
    %9 = arith.cmpi eq, %arg2, %c0_i32_6 : i32
    %10 = arith.extui %9 : i1 to i32
    %c0_i32_7 = arith.constant 0 : i32
    %11 = arith.cmpi ne, %10, %c0_i32_7 : i32
    scf.if %11 {
      %c0_8 = arith.constant 0 : index
      %c0_9 = arith.constant 0 : index
      %12 = vector.load %arg6[%c0_8, %c0_9] : memref<16x128xf32, #tpu.memory_space<vmem>>, vector<16x128xf32>
      %c0_10 = arith.constant 0 : index
      %c0_11 = arith.constant 0 : index
      %13 = vector.load %arg5[%c0_10, %c0_11] : memref<1x128xf32, #tpu.memory_space<vmem>>, vector<1x128xf32>
      %14 = vector.broadcast %13 : vector<1x128xf32> to vector<16x128xf32>
      %15 = arith.addf %12, %14 : vector<16x128xf32>
      %c0_12 = arith.constant 0 : index
      %c0_13 = arith.constant 0 : index
      %16 = vector.load %arg6[%c0_12, %c0_13] : memref<16x128xf32, #tpu.memory_space<vmem>>, vector<16x128xf32>
      tpu.vector_store %arg6[%c0_12, %c0_13], %15 {strides = array<i32>} : memref<16x128xf32, #tpu.memory_space<vmem>>, vector<16x128xf32>,
      %cst_14 = arith.constant dense<0xFF800000> : vector<16xf32>
      %17 = vector.multi_reduction <maximumf>, %15, %cst_14 [1] : vector<16x128xf32> to vector<16xf32>
      %18 = vector.shape_cast %17 : vector<16xf32> to vector<16x1xf32>
      %19 = tpu.reduce_index %15 {axis = 1 : i32, kind = #tpu.reduction_kind<arg_max>} : vector<16x128xf32> -> vector<16xi32>
      %20 = vector.shape_cast %19 : vector<16xi32> to vector<16x1xi32>
      %c128_i32 = arith.constant 128 : i32
      %21 = arith.muli %arg1, %c128_i32 : i32
      %22 = vector.broadcast %21 : i32 to vector<16x1xi32>
      %23 = arith.addi %20, %22 : vector<16x1xi32>
      %24 = vector.shape_cast %18 : vector<16x1xf32> to vector<16x1xf32>
      %25 = vector.broadcast %24 : vector<16x1xf32> to vector<16x128xf32>
      %26 = vector.shape_cast %23 : vector<16x1xi32> to vector<16x1xi32>
      %27 = vector.broadcast %26 : vector<16x1xi32> to vector<16x128xi32>
      %c0_i32_15 = arith.constant 0 : i32
      %28 = arith.cmpi eq, %arg1, %c0_i32_15 : i32
      %29 = arith.extui %28 : i1 to i32
      %c0_i32_16 = arith.constant 0 : i32
      %30 = arith.cmpi ne, %29, %c0_i32_16 : i32
      scf.if %30 {
        %c0_21 = arith.constant 0 : index
        %c0_22 = arith.constant 0 : index
        %37 = vector.load %arg8[%c0_21, %c0_22] : memref<16x128xf32, #tpu.memory_space<vmem>>, vector<16x128xf32>
        tpu.vector_store %arg8[%c0_21, %c0_22], %25 {strides = array<i32>} : memref<16x128xf32, #tpu.memory_space<vmem>>, vector<16x128xf32>,
        %c0_23 = arith.constant 0 : index
        %c0_24 = arith.constant 0 : index
        %38 = vector.load %arg9[%c0_23, %c0_24] : memref<16x128xi32, #tpu.memory_space<vmem>>, vector<16x128xi32>
        tpu.vector_store %arg9[%c0_23, %c0_24], %27 {strides = array<i32>} : memref<16x128xi32, #tpu.memory_space<vmem>>, vector<16x128xi32>,
      } else {
      }
      %c0_i32_17 = arith.constant 0 : i32
      %31 = arith.cmpi sgt, %arg1, %c0_i32_17 : i32
      %32 = arith.extui %31 : i1 to i32
      %c0_i32_18 = arith.constant 0 : i32
      %33 = arith.cmpi ne, %32, %c0_i32_18 : i32
      scf.if %33 {
        %c0_21 = arith.constant 0 : index
        %c0_22 = arith.constant 0 : index
        %37 = vector.load %arg8[%c0_21, %c0_22] : memref<16x128xf32, #tpu.memory_space<vmem>>, vector<16x128xf32>
        %38 = arith.cmpf ogt, %25, %37 : vector<16x128xf32>
        %c0_23 = arith.constant 0 : index
        %c0_24 = arith.constant 0 : index
        %39 = vector.load %arg8[%c0_23, %c0_24] : memref<16x128xf32, #tpu.memory_space<vmem>>, vector<16x128xf32>
        %40 = arith.select %38, %25, %39 : vector<16x128xi1>, vector<16x128xf32>
        %c0_25 = arith.constant 0 : index
        %c0_26 = arith.constant 0 : index
        %41 = vector.load %arg8[%c0_25, %c0_26] : memref<16x128xf32, #tpu.memory_space<vmem>>, vector<16x128xf32>
        tpu.vector_store %arg8[%c0_25, %c0_26], %40 {strides = array<i32>} : memref<16x128xf32, #tpu.memory_space<vmem>>, vector<16x128xf32>,
        %c0_27 = arith.constant 0 : index
        %c0_28 = arith.constant 0 : index
        %42 = vector.load %arg9[%c0_27, %c0_28] : memref<16x128xi32, #tpu.memory_space<vmem>>, vector<16x128xi32>
        %43 = arith.select %38, %27, %42 : vector<16x128xi1>, vector<16x128xi32>
        %c0_29 = arith.constant 0 : index
        %c0_30 = arith.constant 0 : index
        %44 = vector.load %arg9[%c0_29, %c0_30] : memref<16x128xi32, #tpu.memory_space<vmem>>, vector<16x128xi32>
        tpu.vector_store %arg9[%c0_29, %c0_30], %43 {strides = array<i32>} : memref<16x128xi32, #tpu.memory_space<vmem>>, vector<16x128xi32>,
      } else {
      }
      %c0_i32_19 = arith.constant 0 : i32
      %34 = arith.cmpi eq, %arg1, %c0_i32_19 : i32
      %35 = arith.extui %34 : i1 to i32
      %c0_i32_20 = arith.constant 0 : i32
      %36 = arith.cmpi ne, %35, %c0_i32_20 : i32
      scf.if %36 {
        %c0_21 = arith.constant 0 : index
        %c0_22 = arith.constant 0 : index
        %37 = vector.load %arg9[%c0_21, %c0_22] : memref<16x128xi32, #tpu.memory_space<vmem>>, vector<16x128xi32>
        %c0_23 = arith.constant 0 : index
        %c0_24 = arith.constant 0 : index
        %38 = vector.load %arg7[%c0_23, %c0_24] : memref<16x128xi32, #tpu.memory_space<vmem>>, vector<16x128xi32>
        tpu.vector_store %arg7[%c0_23, %c0_24], %37 {strides = array<i32>} : memref<16x128xi32, #tpu.memory_space<vmem>>, vector<16x128xi32>,
      } else {
      }
    } else {
    }
    return
  }
  func.func @transform_0(%arg0: i32, %arg1: i32, %arg2: i32) -> (i32, i32) {
    %c0_i32 = arith.constant 0 : i32
    return %arg0, %arg2 : i32, i32
  }
  func.func @transform_1(%arg0: i32, %arg1: i32, %arg2: i32) -> (i32, i32) {
    %c0_i32 = arith.constant 0 : i32
    return %arg2, %arg1 : i32, i32
  }
  func.func @transform_2(%arg0: i32, %arg1: i32, %arg2: i32) -> (i32, i32) {
    %c0_i32 = arith.constant 0 : i32
    %c0_i32_0 = arith.constant 0 : i32
    return %c0_i32, %arg1 : i32, i32
  }
  func.func @transform_3(%arg0: i32, %arg1: i32, %arg2: i32) -> (i32, i32) {
    %c0_i32 = arith.constant 0 : i32
    return %arg0, %arg1 : i32, i32
  }
  func.func @transform_4(%arg0: i32, %arg1: i32, %arg2: i32) -> (i32, i32) {
    %c0_i32 = arith.constant 0 : i32
    %c0_i32_0 = arith.constant 0 : i32
    return %arg0, %c0_i32 : i32, i32
  }
}

</mosaic_0001>

<bundles_post_ra>
// kernel: squeeze.1
= control target key start
LH: loop header
LB: loop body
LE: loop exit
PB: predicated region body
PF: predicated region fallthrough
CT: control target
= control target key end

     0   :  { %s80_s0 = inlined_call_operand.vmem [shape: s32[16], index: 0, kind: input, shape index: {}]   ;;  %s81_s1 = inlined_call_operand.hbm [shape: s32[2,8], index: 1, kind: output, shape index: {}]  }
   0x1   :  { %v5_v0 = vld [vmem:[%s80_s0] sm:$0x1] }
   0x2   :  { %2 = vsyncpa [#allocation1], 0  ;;  %6 = vst [vmem:[#allocation3] sm:$0x1] %v5_v0  ;;  %vm8_vm0 = vcmask 64512   ;;  %s62_s0 = smov 120  }
   0x3   :  { %s63_s8 = smov [#allocation0]   ;;  %s27_s1 = sshll.u32 %s81_s1, 4  ;;  %s28_s1 = int_to_ptr.hbm [resolvable:$true] %s27_s1 }
   0x4   :  { %s25_s9 = sshll.u32 %s63_s8, 4  ;;  %s26_s9 = int_to_ptr.vmem [resolvable:$true] %s25_s9 }
   0x9   :  { %v10_v1 = vld [vmem:[#allocation3] sm:$0x1]  }
   0xa   :  { %v7_v2 = vld [vmem:[#allocation3] sm:$0x1]   ;;  %11 = vrot.lane.b32.xlu0 %v10_v1, %s62_s0 }
   0xb   :  { %9 = vst.msk [vmem:[#allocation2] sm:$0x1] %vm8_vm0, %v7_v2  }
  0x7c   :  { %v12_v3 = vpop.permute.xlu0 %11  }
  0x7d   :  { %15 = vst.msk [vmem:[#allocation2 + $0x1] sm:$0x1] %vm8_vm0, %v12_v3  }
  0x84   :  { %v18_v4 = vld [vmem:[#allocation2] sm:$0x3] }
  0x85   :  { %21 = vst [vmem:[#allocation0] sm:$0x3] %v18_v4 }
  0x86   :  { %30 = dma.vmem_to_hbm [thread:$0]  %s26_s9, 32, %s28_s1, [#allocation1]  }
  0x87   :  { %60 = dma.done.wait [#allocation1], 32  }
  0x88   :  { %61 = vsyncadd [#allocation1], 4294967264 }
  0x89   :  { %33 = vsyncpa [#allocation1], 1 }

// kernel: alphabet_decoder.1
= control target key start
LH: loop header
LB: loop body
LE: loop exit
PB: predicated region body
PF: predicated region fallthrough
CT: control target
= control target key end

     0   :  { %s250_s1 = inlined_call_operand.vmem [shape: f32[128,128], index: 1, kind: input, shape index: {}]   ;;  %s251_s0 = inlined_call_operand.vmem [shape: f32[16,128], index: 0, kind: input, shape index: {}]   ;;  %s252_s2 = inlined_call_operand.vmem [shape: f32[1,128], index: 2, kind: input, shape index: {}]   ;;  %s253_s3 = inlined_call_operand.vmem [shape: f32[16,128], index: 3, kind: output, shape index: {0}]   ;;  %s254_s4 = inlined_call_operand.vmem [shape: s32[16,128], index: 4, kind: output, shape index: {1}]  }
   0x1   :  { %v33_v0 = vld [vmem:[%s250_s1 + $0x78] sm:$0xff]  ;;  %v32_v1 = vld [vmem:[%s250_s1 + $0x70] sm:$0xff]  ;;  %v31_v2 = vld [vmem:[%s250_s1 + $0x68] sm:$0xff] }
   0x2   :  { %34 = vmatpush.msra.mxu0 %v33_v0  ;;  %139 = vmatpush.msra.mxu1 %v33_v0  ;;  %v30_v3 = vld [vmem:[%s250_s1 + $0x60] sm:$0xff]  ;;  %v29_v4 = vld [vmem:[%s250_s1 + $0x58] sm:$0xff]  ;;  %v28_v5 = vld [vmem:[%s250_s1 + $0x50] sm:$0xff] }
   0x3   :  { %v27_v6 = vld [vmem:[%s250_s1 + $0x48] sm:$0xff]  ;;  %v26_v7 = vld [vmem:[%s250_s1 + $0x40] sm:$0xff]  ;;  %v25_v8 = vld [vmem:[%s250_s1 + $0x38] sm:$0xff] }
   0x4   :  { %35 = vmatpush.msra.mxu0 %v32_v1  ;;  %140 = vmatpush.msra.mxu1 %v32_v1  ;;  %v24_v9 = vld [vmem:[%s250_s1 + $0x30] sm:$0xff]  ;;  %v23_v10 = vld [vmem:[%s250_s1 + $0x28] sm:$0xff]  ;;  %v22_v11 = vld [vmem:[%s250_s1 + $0x20] sm:$0xff] }
   0x5   :  { %v21_v12 = vld [vmem:[%s250_s1 + $0x18] sm:$0xff]  ;;  %v20_v13 = vld [vmem:[%s250_s1 + $0x10] sm:$0xff]  ;;  %v19_v14 = vld [vmem:[%s250_s1 + $0x8] sm:$0xff] }
   0x6   :  { %36 = vmatpush.msra.mxu0 %v31_v2  ;;  %141 = vmatpush.msra.mxu1 %v31_v2  ;;  %v18_v15 = vld [vmem:[%s250_s1] sm:$0xff]  ;;  %v17_v17 = vld [vmem:[%s251_s0 + $0x8] sm:$0xff] }
   0x7   :  { %v16_v16 = vld [vmem:[%s251_s0] sm:$0xff] }
   0x8   :  { %37 = vmatpush.msra.mxu0 %v30_v3  ;;  %142 = vmatpush.msra.mxu1 %v30_v3  ;;  %v155_v18 = vld [vmem:[%s252_s2] ss:$0 sm:$0xff] }
   0xa   :  { %38 = vmatpush.msra.mxu0 %v29_v4  ;;  %143 = vmatpush.msra.mxu1 %v29_v4 }
   0xc   :  { %39 = vmatpush.msra.mxu0 %v28_v5  ;;  %144 = vmatpush.msra.mxu1 %v28_v5 }
   0xe   :  { %40 = vmatpush.msra.mxu0 %v27_v6  ;;  %145 = vmatpush.msra.mxu1 %v27_v6 }
  0x10   :  { %41 = vmatpush.msra.mxu0 %v26_v7  ;;  %146 = vmatpush.msra.mxu1 %v26_v7 }
  0x12   :  { %42 = vmatpush.msra.mxu0 %v25_v8  ;;  %147 = vmatpush.msra.mxu1 %v25_v8 }
  0x14   :  { %43 = vmatpush.msra.mxu0 %v24_v9  ;;  %148 = vmatpush.msra.mxu1 %v24_v9 }
  0x16   :  { %44 = vmatpush.msra.mxu0 %v23_v10  ;;  %149 = vmatpush.msra.mxu1 %v23_v10 }
  0x18   :  { %45 = vmatpush.msra.mxu0 %v22_v11  ;;  %150 = vmatpush.msra.mxu1 %v22_v11 }
  0x1a   :  { %46 = vmatpush.msra.mxu0 %v21_v12  ;;  %151 = vmatpush.msra.mxu1 %v21_v12 }
  0x1c   :  { %47 = vmatpush.msra.mxu0 %v20_v13  ;;  %152 = vmatpush.msra.mxu1 %v20_v13 }
  0x1e   :  { %48 = vmatpush.msra.mxu0 %v19_v14  ;;  %153 = vmatpush.msra.mxu1 %v19_v14 }
  0x20   :  { %49 = vmatpush.msra.mxu0 %v18_v15  ;;  %154 = vmatpush.msra.mxu1 %v18_v15 }
  0x21   :  { %50 = vmatmul.f32.vlgmr.msra.gmra.mxu0 %v16_v16  ;;  %53 = vmatmul.f32.vlgmr.msra.gmra.mxu1 %v17_v17 }
  0x9e   :  { %v51_v19 = vpop.f32.mrf.mxu0  ;;  %v54_v20 = vpop.f32.mrf.mxu1 }
  0x9f   :  { %v82_v21 = vadd.f32 %v155_v18, %v51_v19  ;;  %v83_v22 = vadd.f32 %v155_v18, %v54_v20 }
  0xa1   :  { %90 = vmax.index.xlane.f32.xlu0 %v82_v21  ;;  %84 = vst [vmem:[%s253_s3] sm:$0xff] %v82_v21 }
  0xa2   :  { %85 = vst [vmem:[%s253_s3 + $0x8] sm:$0xff] %v83_v22 }
  0xa9   :  { %92 = vmax.index.xlane.f32.xlu0 %v83_v22 }
 0x114   :  { %v91_v23 = vpop.xlane.xlu0 %90 }
 0x115   :  { %129 = vst [vmem:[%s254_s4] sm:$0xff] %v91_v23 }
 0x11c   :  { %v93_v24 = vpop.xlane.xlu0 %92 }
 0x11d   :  { %130 = vst [vmem:[%s254_s4 + $0x8] sm:$0xff] %v93_v24 }

</bundles_post_ra>
